<compile_context>
chip_gen: v7x
topology: tpu7x:2x2x1
jax: 0.10.0
libtpu: 0.0.40
codegen_flags: <defaults>
</compile_context>

<pallas_src>
import jax
import jax.numpy as jnp
from jax.experimental import pallas as pl
from jax.experimental.pallas import tpu as pltpu

LANE = 128  # TPU lane width


def conv1x1_kernel(x_ref, w_ref, b_ref, o_ref):
    # x_ref: (C_in, T)  VMEM tile of the flattened image (lane axis = pixels)
    # w_ref: (C_out, C_in) VMEM, resident (constant index_map)
    # b_ref: (C_out, 1)    VMEM, resident
    # o_ref: (C_out, T)    VMEM output tile
    x = x_ref[...]
    w = w_ref[...]
    c_in = x_ref.shape[0]
    # VPU FMA ladder: the contraction (K = C_in = 3) is far too small for the MXU.
    #   out[c, p] = sum_k w[c, k] * x[k, p] + b[c]
    acc = w[:, 0:1] * x[0:1, :]                 # (C_out,1)*(1,T) -> (C_out,T)
    for k in range(1, c_in):
        acc = acc + w[:, k:k+1] * x[k:k+1, :]
    # v1 = conv(x); v2 = v1 - False == v1 (identity, folded away)
    o_ref[...] = (acc + b_ref[...]).astype(o_ref.dtype)


def model_forward(x_nchw, weight, bias, *, max_tile_lanes=131072):
    """x_nchw: (N, C_in, H, W) f32; weight: (C_out, C_in) f32; bias: (C_out,) f32."""
    n, c_in, h, w = x_nchw.shape
    c_out = weight.shape[0]
    hw = h * w

    # NCHW -> (N, C_in, H*W): contiguous reshape, no transpose / extra HBM pass.
    x_flat = x_nchw.reshape(n, c_in, hw)
    b_col = bias.reshape(c_out, 1)

    # ---- generation-aware VMEM budget & lane-tile size ----------------------
    try:
        phys_vmem = int(pltpu.get_tpu_info().vmem_capacity_bytes)
    except Exception:
        phys_vmem = 64 << 20                       # conservative (v7x-sized) fallback
    budget = min(phys_vmem // 2, 48 << 20)         # ~32 MiB on v7x, 48 MiB on v5e/v6e

    pad8 = lambda c: -(-c // 8) * 8
    # double-buffered in+out tiles + headroom for in-kernel (C_out, tile) temps
    bytes_per_lane = (pad8(c_in) + pad8(c_out)) * 4 * 2 + pad8(c_out) * 4 * 2
    tile_cap = max(LANE, (min(budget // bytes_per_lane, max_tile_lanes) // LANE) * LANE)

    if hw > tile_cap:
        # Many 128-aligned tiles; the final block may be partial (masked by Pallas).
        tile = tile_cap
    elif n == 1 and hw >= 2 * LANE:
        # Keep >= 2 grid steps so both v7x TensorCores get work for batch=1.
        tile = min(tile_cap, (-(-((hw + 1) // 2) // LANE)) * LANE)
    else:
        # Single full-extent block per image (legal for any hw, incl. hw < 128).
        tile = hw
    grid = (n, -(-hw // tile))

    out_flat = pl.pallas_call(
        conv1x1_kernel,
        out_shape=jax.ShapeDtypeStruct((n, c_out, hw), jnp.float32),
        grid_spec=pltpu.PrefetchScalarGridSpec(
            num_scalar_prefetch=0,
            grid=grid,
            in_specs=[
                # x tile: batch dim squeezed, C_in full, lane-dense HW tile.
                pl.BlockSpec((None, c_in, tile), lambda b, t: (b, 0, t)),
                # weight / bias: constant index_map -> fetched once, kept resident.
                pl.BlockSpec((c_out, c_in), lambda b, t: (0, 0)),
                pl.BlockSpec((c_out, 1), lambda b, t: (0, 0)),
            ],
            out_specs=pl.BlockSpec((None, c_out, tile), lambda b, t: (b, 0, t)),
        ),
        compiler_params=pltpu.CompilerParams(
            dimension_semantics=("parallel", "parallel"),
            vmem_limit_bytes=int(budget),
        ),
        cost_estimate=pl.CostEstimate(
            flops=2 * c_out * c_in * n * hw,
            transcendentals=0,
            bytes_accessed=4 * n * hw * (c_in + c_out) + 4 * c_out * (c_in + 1),
        ),
    )(x_flat, weight, b_col)

    # (N, C_out, HW) -> (N, C_out, H, W): free contiguous reshape, no crop needed.
    return out_flat.reshape(n, c_out, h, w)


if __name__ == "__main__":
    key = jax.random.PRNGKey(0)
    kx, kw, kb, kx2, kx3 = jax.random.split(key, 5)

    c_in, c_out = 3, 4
    # Conv2d(3 -> 4, 1x1) parameters with the 1x1 spatial dims squeezed: (4,3,1,1) -> (4,3).
    weight = jax.random.normal(kw, (c_out, c_in), dtype=jnp.float32) * (1.0 / jnp.sqrt(c_in))
    bias = jax.random.normal(kb, (c_out,), dtype=jnp.float32) * 0.1

    def ref_fn(x):
        return jnp.einsum("oc,nchw->nohw", weight, x) + bias.reshape(1, c_out, 1, 1)

    # Literal module input: x4 = torch.randn(1, 3, 2, 2)  -> single tiny full-extent block.
    x = jax.random.normal(kx, (1, 3, 2, 2), dtype=jnp.float32)
    out = jax.block_until_ready(model_forward(x, weight, bias))
    assert out.shape == (1, 4, 2, 2)
    assert jnp.allclose(out, ref_fn(x), atol=1e-5, rtol=1e-5)

    # batch=2, HW a multiple of 128 -> one full-HW tile per image, grid (2, 1).
    x2 = jax.random.normal(kx2, (2, 3, 16, 16), dtype=jnp.float32)
    out2 = jax.block_until_ready(model_forward(x2, weight, bias))
    assert out2.shape == (2, 4, 16, 16)
    assert jnp.allclose(out2, ref_fn(x2), atol=1e-5, rtol=1e-5)

    # batch=1, HW=900 -> 2-way 128-aligned split (tile=512) with a partial final block.
    x3 = jax.random.normal(kx3, (1, 3, 30, 30), dtype=jnp.float32)
    out3 = jax.block_until_ready(model_forward(x3, weight, bias))
    assert out3.shape == (1, 4, 30, 30)
    assert jnp.allclose(out3, ref_fn(x3), atol=1e-5, rtol=1e-5)

    print("KERNEL_OK")
</pallas_src>

<mosaic_0001>
module attributes {stable_mosaic.version = 11 : i64} {
  func.func @conv1x1_kernel(%arg0: i32, %arg1: i32, %arg2: memref<1x3x4xf32, #tpu.memory_space<vmem>>, %arg3: memref<4x3xf32, #tpu.memory_space<vmem>>, %arg4: memref<4x1xf32, #tpu.memory_space<vmem>>, %arg5: memref<1x4x4xf32, #tpu.memory_space<vmem>>) attributes {dimension_semantics = [#tpu.dimension_semantics<parallel>, #tpu.dimension_semantics<parallel>], iteration_bounds = array<i64: 1, 1>, scalar_prefetch = 0 : i64, scratch_operands = 0 : i64, tpu.core_type = #tpu.core_type<tc>, window_params = [{transform_indices = @transform_0, window_bounds = array<i64: 1, 3, 4>}, {pipeline_mode = #tpu.pipeline_mode<synchronous>, transform_indices = @transform_1, window_bounds = array<i64: 4, 3>}, {pipeline_mode = #tpu.pipeline_mode<synchronous>, transform_indices = @transform_2, window_bounds = array<i64: 4, 1>}, {transform_indices = @transform_3, window_bounds = array<i64: 1, 4, 4>}]} {
    %c0 = arith.constant 0 : index
    %c0_0 = arith.constant 0 : index
    %c0_1 = arith.constant 0 : index
    %0 = vector.load %arg2[%c0, %c0_0, %c0_1] : memref<1x3x4xf32, #tpu.memory_space<vmem>>, vector<1x3x4xf32>
    %1 = vector.shape_cast %0 : vector<1x3x4xf32> to vector<3x4xf32>
    %c0_2 = arith.constant 0 : index
    %c0_3 = arith.constant 0 : index
    %2 = vector.load %arg3[%c0_2, %c0_3] : memref<4x3xf32, #tpu.memory_space<vmem>>, vector<4x3xf32>
    %3 = vector.extract_strided_slice %2 {offsets = [0, 0], sizes = [4, 1], strides = [1, 1]} : vector<4x3xf32> to vector<4x1xf32>
    %4 = vector.extract_strided_slice %1 {offsets = [0, 0], sizes = [1, 4], strides = [1, 1]} : vector<3x4xf32> to vector<1x4xf32>
    %5 = vector.broadcast %3 : vector<4x1xf32> to vector<4x4xf32>
    %6 = vector.broadcast %4 : vector<1x4xf32> to vector<4x4xf32>
    %7 = arith.mulf %5, %6 : vector<4x4xf32>
    %8 = vector.extract_strided_slice %2 {offsets = [0, 1], sizes = [4, 1], strides = [1, 1]} : vector<4x3xf32> to vector<4x1xf32>
    %9 = vector.extract_strided_slice %1 {offsets = [1, 0], sizes = [1, 4], strides = [1, 1]} : vector<3x4xf32> to vector<1x4xf32>
    %10 = vector.broadcast %8 : vector<4x1xf32> to vector<4x4xf32>
    %11 = vector.broadcast %9 : vector<1x4xf32> to vector<4x4xf32>
    %12 = arith.mulf %10, %11 : vector<4x4xf32>
    %13 = arith.addf %7, %12 : vector<4x4xf32>
    %14 = vector.extract_strided_slice %2 {offsets = [0, 2], sizes = [4, 1], strides = [1, 1]} : vector<4x3xf32> to vector<4x1xf32>
    %15 = vector.extract_strided_slice %1 {offsets = [2, 0], sizes = [1, 4], strides = [1, 1]} : vector<3x4xf32> to vector<1x4xf32>
    %16 = vector.broadcast %14 : vector<4x1xf32> to vector<4x4xf32>
    %17 = vector.broadcast %15 : vector<1x4xf32> to vector<4x4xf32>
    %18 = arith.mulf %16, %17 : vector<4x4xf32>
    %19 = arith.addf %13, %18 : vector<4x4xf32>
    %c0_4 = arith.constant 0 : index
    %c0_5 = arith.constant 0 : index
    %20 = vector.load %arg4[%c0_4, %c0_5] : memref<4x1xf32, #tpu.memory_space<vmem>>, vector<4x1xf32>
    %21 = vector.broadcast %20 : vector<4x1xf32> to vector<4x4xf32>
    %22 = arith.addf %19, %21 : vector<4x4xf32>
    %c0_6 = arith.constant 0 : index
    %c0_7 = arith.constant 0 : index
    %c0_8 = arith.constant 0 : index
    %23 = vector.load %arg5[%c0_6, %c0_7, %c0_8] : memref<1x4x4xf32, #tpu.memory_space<vmem>>, vector<1x4x4xf32>
    %24 = vector.shape_cast %23 : vector<1x4x4xf32> to vector<4x4xf32>
    %25 = vector.shape_cast %22 : vector<4x4xf32> to vector<1x4x4xf32>
    tpu.vector_store %arg5[%c0_6, %c0_7, %c0_8], %25 {strides = array<i32>} : memref<1x4x4xf32, #tpu.memory_space<vmem>>, vector<1x4x4xf32>,
    return
  }
  func.func @transform_0(%arg0: i32, %arg1: i32) -> (i32, i32, i32) {
    %c0_i32 = arith.constant 0 : i32
    %c0_i32_0 = arith.constant 0 : i32
    return %arg0, %c0_i32, %arg1 : i32, i32, i32
  }
  func.func @transform_1(%arg0: i32, %arg1: i32) -> (i32, i32) {
    %c0_i32 = arith.constant 0 : i32
    %c0_i32_0 = arith.constant 0 : i32
    %c0_i32_1 = arith.constant 0 : i32
    return %c0_i32, %c0_i32_0 : i32, i32
  }
  func.func @transform_2(%arg0: i32, %arg1: i32) -> (i32, i32) {
    %c0_i32 = arith.constant 0 : i32
    %c0_i32_0 = arith.constant 0 : i32
    %c0_i32_1 = arith.constant 0 : i32
    return %c0_i32, %c0_i32_0 : i32, i32
  }
  func.func @transform_3(%arg0: i32, %arg1: i32) -> (i32, i32, i32) {
    %c0_i32 = arith.constant 0 : i32
    %c0_i32_0 = arith.constant 0 : i32
    return %arg0, %c0_i32, %arg1 : i32, i32, i32
  }
}

</mosaic_0001>

<bundles_post_ra>
// kernel: tpu_custom_call.1
= control target key start
LH: loop header
LB: loop body
LE: loop exit
PB: predicated region body
PF: predicated region fallthrough
CT: control target
= control target key end

     0   :  { %v103_v1 = vmov 0   ;;  %v104_v2 = vmov 2   ;;  %s148_s0 = inlined_call_operand.vmem [shape: f32[1,3,4], index: 0, kind: input, shape index: {}]   ;;  %s149_s1 = inlined_call_operand.vmem [shape: f32[4,3], index: 1, kind: input, shape index: {}]   ;;  %s150_s2 = inlined_call_operand.vmem [shape: f32[4,1], index: 2, kind: input, shape index: {}]   ;;  %s151_s3 = inlined_call_operand.hbm [shape: f32[1,4,4], index: 3, kind: output, shape index: {}]  }
   0x1   :  { %v16_v0 = vld [vmem:[%s149_s1] sm:$0xf]  ;;  %74 = vset.pattern.permute.xlu0 %v103_v1  ;;  %76 = vset.pattern.permute.xlu1 %v104_v2 }
   0x2   :  { %8 = vsyncpa [#allocation3], 0  ;;  %19 = vperm.xlu0 %74, %v16_v0   ;;  %38 = vperm.xlu1 %76, %v16_v0   ;;  %v47_v3 = vld [vmem:[%s150_s2] sm:$0xf]  ;;  %v105_v4 = vmov 1   ;;  %v22_v5 = vlaneseq  ;;  %s106_s2 = smov [#allocation2]  }
   0x3   :  { %v15_v10 = vld [vmem:[%s148_s0] sm:$0x7]  ;;  %s62_s17 = sshll.u32 %s106_s2, 4  ;;  %vm54_vm0 = vcmask 27648   ;;  %s63_s17 = int_to_ptr.vmem [resolvable:$true] %s62_s17 }
   0x4   :  { %v23_v6 = vshrl.u32 %v22_v5, 7  ;;  %s79_s18 = scalar_lea.vmem %s63_s17, 64  ;;  %p84_p1 = scmp.lt.s32.totalorder %s63_s17, %s63_s17 }
   0x5   :  { %p80_p0 = scmp.ne.s32.totalorder %s63_s17, %s79_s18  ;;  %p85_p2 = scmp.lt.s32.totalorder %s79_s18, %s79_s18 }
   0x6   :  { %75 = vset.pattern.permute.xlu0 %v105_v4  ;;  %77 = vset.pattern.permute.xlu1 %v103_v1  ;;  %v24_v7 = vsub.s32 0, %v23_v6  ;;  %v33_v8 = vsub.s32 1, %v23_v6  ;;  %v43_v9 = vsub.s32 2, %v23_v6 }
   0x7   :  { %28 = vperm.xlu0 %75, %v16_v0   ;;  %50 = vperm.xlu1 %77, %v47_v3   ;;  %p86_p3 = por %p85_p2, %p84_p1 }
   0x8   :  { %v25_v12 = vrot.slane %v15_v10, %v24_v7  ;;  %v34_v13 = vrot.slane %v15_v10, %v33_v8  ;;  %v44_v14 = vrot.slane %v15_v10, %v43_v9 }
   0x9   :  { %p87_p4 = pnand %p86_p3, %p80_p0 }
   0xb   :  { %78 = vset.pattern.permute.xlu0 %v103_v1 }
  0x81   :  { %v20_v11 = vpop.permute.xlu0 %19  ;;  %v39_v15 = vpop.permute.xlu1 %38 }
  0x82   :  { %v26_v17 = vmul.f32 %v25_v12, %v20_v11  ;;  %v45_v19 = vmul.f32 %v44_v14, %v39_v15 }
  0x86   :  { %v29_v16 = vpop.permute.xlu0 %28  ;;  %v51_v21 = vpop.permute.xlu1 %50 }
  0x87   :  { %v35_v18 = vmul.f32 %v34_v13, %v29_v16 }
  0x89   :  { %v36_v20 = vadd.f32 %v35_v18, %v26_v17 }
  0x8b   :  { %v46_v22 = vadd.f32 %v45_v19, %v36_v20 }
  0x8d   :  { %v53_v23 = vadd.f32 %v51_v21, %v46_v22 }
  0x8f   :  { %55 = vst.msk [vmem:[#allocation2] sm:$0xf] %vm54_vm0, %v53_v23 }
  0x90   :  { %90 = shalt.err (!%p87_p4)
}
  0x91   :  { %s91_s20 = scalar_lea.hbm %s151_s3, 64 }
  0x92   :  { %p92_p5 = scmp.ne.s32.totalorder %s151_s3, %s91_s20  ;;  %p95_p6 = scmp.lt.u32.totalorder %s91_s20, %s151_s3 }
  0x94   :  { %p97_p7 = pnand %p95_p6, %p92_p5 }
  0x96   :  { %100 = shalt.err (!%p97_p7)
}
  0x97   :  { %65 = dma.vmem_to_hbm [thread:$0]  %s63_s17, 64, %s151_s3, [#allocation3]  }
  0x98   :  { %101 = dma.done.wait [#allocation3], 64  }
  0x99   :  { %102 = vsyncadd [#allocation3], 4294967232 }
  0x9a   :  { %69 = vsyncpa [#allocation3], 1 }

</bundles_post_ra>
